<compile_context>
chip_gen: v7x
topology: tpu7x:2x2x1
jax: 0.10.0
libtpu: 0.0.40
codegen_flags: <defaults>
</compile_context>

<pallas_src>
import functools
import math

import jax
import jax.numpy as jnp
from jax import lax
from jax.experimental import pallas as pl
from jax.experimental.pallas import tpu as pltpu

_INV_SQRT2 = 1.0 / math.sqrt(2.0)
_K_TILE_THRESHOLD_BYTES = 24 << 20   # start K-tiling w1 above ~24 MiB (v7x VMEM = 64 MiB)


def _epilogue(h, b1, w2, b2, eps, approx_gelu, out_dtype):
    """bias -> GeLU -> LayerNorm (affine folded into w2/b2) -> Linear2 on f32 [tm, hid]."""
    h = h + b1
    if approx_gelu:
        h = jax.nn.gelu(h, approximate=True)            # tanh form -> EUP slot
    else:
        h = h * 0.5 * (1.0 + lax.erf(h * _INV_SQRT2))   # exact torch erf form
    m1 = jnp.mean(h, axis=-1, keepdims=True)
    m2 = jnp.mean(h * h, axis=-1, keepdims=True)        # var = E[h^2] - mean^2
    var = jnp.maximum(m2 - m1 * m1, 0.0)
    h = (h - m1) * lax.rsqrt(var + eps)
    out = jnp.dot(h.astype(w2.dtype), w2, preferred_element_type=jnp.float32) + b2
    return out.astype(out_dtype)


def _ground_head_kernel(x_ref, w1_ref, b1_ref, w2_ref, b2_ref, o_ref, *,
                        eps, approx_gelu):
    h = jnp.dot(x_ref[...], w1_ref[...], preferred_element_type=jnp.float32)
    o_ref[...] = _epilogue(h,
                           b1_ref[...].astype(jnp.float32),
                           w2_ref[...],
                           b2_ref[...].astype(jnp.float32),
                           eps, approx_gelu, o_ref.dtype)


def _ground_head_kernel_ktiled(x_ref, w1_ref, b1_ref, w2_ref, b2_ref, o_ref,
                               acc_ref, *, eps, approx_gelu):
    k = pl.program_id(1)

    @pl.when(k == 0)
    def _():
        acc_ref[...] = jnp.zeros_like(acc_ref)

    acc_ref[...] += jnp.dot(x_ref[...], w1_ref[...],
                            preferred_element_type=jnp.float32)

    @pl.when(k == pl.num_programs(1) - 1)
    def _():
        o_ref[...] = _epilogue(acc_ref[...],
                               b1_ref[...].astype(jnp.float32),
                               w2_ref[...],
                               b2_ref[...].astype(jnp.float32),
                               eps, approx_gelu, o_ref.dtype)


def _choose_batch_tile(B, block_b):
    """Pick (tm, padded_B): tm is a multiple of 8 that divides padded_B, preferring no
    padding beyond the sublane round-up and >=2 grid blocks (v7x megacore)."""
    b8 = pl.cdiv(B, 8) * 8
    if b8 <= block_b:
        if b8 >= 16 and b8 % 16 == 0:
            return b8 // 2, b8          # two blocks so both v7x TensorCores get work
        return b8, b8
    best = 8
    for tm in range(block_b, 7, -8):
        if b8 % tm == 0:
            best = tm
            break
    if best >= max(64, block_b // 4):
        return best, b8                 # no batch padding needed
    return block_b, pl.cdiv(b8, block_b) * block_b


def ground_head(x, w1, b1, gamma, beta, w2, b2, *, eps=1e-12, block_b=256,
                approx_gelu=False, matmul_dtype=None, out_dtype=jnp.float32):
    """x: [B, in_dim] (or list concatenated along axis 1) -> [B, ground_dim].

    Weights stored transposed vs. PyTorch: w1 [in_dim, hid_dim], w2 [hid_dim, ground_dim].
    Biases / LayerNorm params are [1, dim] rows.  Set matmul_dtype=jnp.bfloat16 /
    out_dtype=jnp.bfloat16 / approx_gelu=True for the faster (non-bit-exact) variants.
    """
    if isinstance(x, (list, tuple)):        # mirror GroundHead.forward(list)
        x = jnp.concatenate(x, axis=1)

    B, in_dim = x.shape
    hid_dim = w1.shape[1]
    ground_dim = w2.shape[1]

    # Fold LayerNorm affine into linear-2 (exact algebra):
    #   (n * gamma + beta) @ w2 + b2 == n @ (gamma[:,None] * w2) + (beta @ w2 + b2)
    g = gamma.reshape(-1).astype(jnp.float32)
    bt = beta.reshape(-1).astype(jnp.float32)
    w2f = (w2.astype(jnp.float32) * g[:, None]).astype(w2.dtype)
    b2f = (bt @ w2.astype(jnp.float32)
           + b2.reshape(-1).astype(jnp.float32)).reshape(1, ground_dim)

    # Optional bf16 MXU operands (halves resident weights, ~2x matmul rate); f32 acc kept.
    if matmul_dtype is not None:
        x = x.astype(matmul_dtype)
        w1 = w1.astype(matmul_dtype)
        w2f = w2f.astype(matmul_dtype)

    # Lane-dense output: pad the second linear's out dim to a multiple of 128.
    n_pad = pl.cdiv(ground_dim, 128) * 128
    if n_pad != ground_dim:
        w2p = jnp.pad(w2f, ((0, 0), (0, n_pad - ground_dim)))
        b2p = jnp.pad(b2f, ((0, 0), (0, n_pad - ground_dim)))
    else:
        w2p, b2p = w2f, b2f
    b1r = b1.reshape(1, hid_dim)

    # Batch tiling (prefers a tile dividing B so no wrapper-side jnp.pad of x).
    tm, b_pad = _choose_batch_tile(B, block_b)
    xp = x if b_pad == B else jnp.pad(x, ((0, b_pad - B), (0, 0)))
    n_blocks = b_pad // tm

    # Optional K tiling over in_dim when resident w1 would blow v7x's 64 MiB VMEM.
    w1_bytes = w1.size * w1.dtype.itemsize
    tk = 0
    if w1_bytes > _K_TILE_THRESHOLD_BYTES:
        for cand in (512, 256, 128):
            if in_dim % cand == 0:
                tk = cand
                break
        # TODO(synk): pad in_dim when it is not a multiple of 128 so huge-hidden configs
        # can still take the K-tiled path; fall back to a resident w1 for now.

    def nbytes(shape, dtype):
        return int(math.prod(shape)) * jnp.dtype(dtype).itemsize

    out_tile = nbytes((tm, n_pad), out_dtype)
    if tk:
        resident = (2 * nbytes((tm, tk), xp.dtype)          # x tiles, double-buffered
                    + 2 * nbytes((tk, hid_dim), w1.dtype)    # w1 K-tiles, double-buffered
                    + nbytes((1, hid_dim), b1r.dtype)
                    + nbytes((hid_dim, n_pad), w2p.dtype)
                    + nbytes((1, n_pad), b2p.dtype)
                    + 2 * out_tile
                    + nbytes((tm, hid_dim), jnp.float32))    # f32 accumulator scratch
    else:
        resident = (2 * nbytes((tm, in_dim), xp.dtype)
                    + nbytes((in_dim, hid_dim), w1.dtype)
                    + nbytes((1, hid_dim), b1r.dtype)
                    + nbytes((hid_dim, n_pad), w2p.dtype)
                    + nbytes((1, n_pad), b2p.dtype)
                    + 2 * out_tile
                    + nbytes((tm, hid_dim), jnp.float32))    # live f32 hidden tile
    vmem_limit = int(min(128 << 20, max(16 << 20, 2 * resident + (4 << 20))))

    cost = pl.CostEstimate(
        flops=2 * b_pad * (in_dim * hid_dim + hid_dim * n_pad),
        transcendentals=b_pad * hid_dim,
        bytes_accessed=int(xp.size * xp.dtype.itemsize
                           + w1.size * w1.dtype.itemsize
                           + b1r.size * b1r.dtype.itemsize
                           + w2p.size * w2p.dtype.itemsize
                           + b2p.size * b2p.dtype.itemsize
                           + b_pad * n_pad * jnp.dtype(out_dtype).itemsize),
    )

    def _run(buffer_constants):
        # Single-buffer the operands whose block index never changes (halves their VMEM).
        kw = {"pipeline_mode": pl.Buffered(1)} if buffer_constants else {}
        if tk == 0:
            grid = (n_blocks,)
            in_specs = [
                pl.BlockSpec((tm, in_dim), lambda i: (i, 0)),
                pl.BlockSpec((in_dim, hid_dim), lambda i: (0, 0), **kw),
                pl.BlockSpec((1, hid_dim), lambda i: (0, 0), **kw),
                pl.BlockSpec((hid_dim, n_pad), lambda i: (0, 0), **kw),
                pl.BlockSpec((1, n_pad), lambda i: (0, 0), **kw),
            ]
            out_specs = pl.BlockSpec((tm, n_pad), lambda i: (i, 0))
            kernel = functools.partial(_ground_head_kernel, eps=eps,
                                       approx_gelu=approx_gelu)
            scratch_shapes = []
            dim_sem = ("parallel",)
        else:
            grid = (n_blocks, in_dim // tk)
            in_specs = [
                pl.BlockSpec((tm, tk), lambda i, k: (i, k)),
                pl.BlockSpec((tk, hid_dim), lambda i, k: (k, 0)),
                pl.BlockSpec((1, hid_dim), lambda i, k: (0, 0), **kw),
                pl.BlockSpec((hid_dim, n_pad), lambda i, k: (0, 0), **kw),
                pl.BlockSpec((1, n_pad), lambda i, k: (0, 0), **kw),
            ]
            out_specs = pl.BlockSpec((tm, n_pad), lambda i, k: (i, 0))
            kernel = functools.partial(_ground_head_kernel_ktiled, eps=eps,
                                       approx_gelu=approx_gelu)
            scratch_shapes = [pltpu.VMEM((tm, hid_dim), jnp.float32)]
            dim_sem = ("parallel", "arbitrary")

        return pl.pallas_call(
            kernel,
            out_shape=jax.ShapeDtypeStruct((b_pad, n_pad), out_dtype),
            grid=grid,
            in_specs=in_specs,
            out_specs=out_specs,
            scratch_shapes=scratch_shapes,
            compiler_params=pltpu.CompilerParams(
                dimension_semantics=dim_sem,
                vmem_limit_bytes=vmem_limit),
            cost_estimate=cost,
        )(xp, w1, b1r, w2p, b2p)

    try:
        out_full = _run(True)
    except Exception:
        # Fallback if BlockSpec.pipeline_mode / Buffered(1) is not honoured by this
        # jax version on top-level pallas_call grids: default double buffering.
        out_full = _run(False)

    return out_full[:B, :ground_dim]


def reference_ground_head(x, w1, b1, gamma, beta, w2, b2, *, eps=1e-12):
    h = x @ w1 + b1
    h = h * 0.5 * (1.0 + lax.erf(h / math.sqrt(2.0)))
    mean = jnp.mean(h, axis=-1, keepdims=True)
    var = jnp.mean((h - mean) ** 2, axis=-1, keepdims=True)
    h = (h - mean) / jnp.sqrt(var + eps)
    h = h * gamma + beta
    return h @ w2 + b2


if __name__ == "__main__":
    # Synthetic GroundHead config: hidden_size=32 -> hid_dim=64,
    # visual_coord_dim=4 -> ground_dim=3, batch=8, layer_norm_eps=1e-12.
    batch = 8
    in_dim = 32                 # model_config.hidden_size
    hid_dim = 2 * in_dim
    visual_coord_dim = 4
    ground_dim = visual_coord_dim - 1
    eps = 1e-12                 # model_config.layer_norm_eps

    key = jax.random.PRNGKey(0)
    kx, kw1, kb1, kg, kbt, kw2, kb2 = jax.random.split(key, 7)

    x = jax.random.normal(kx, (batch, in_dim), dtype=jnp.float32)

    # Deterministic parameter init (Linear weights stored [in, out]).
    w1 = jax.random.normal(kw1, (in_dim, hid_dim), dtype=jnp.float32) * (1.0 / math.sqrt(in_dim))
    b1 = jax.random.normal(kb1, (1, hid_dim), dtype=jnp.float32) * 0.02
    gamma = 1.0 + 0.1 * jax.random.normal(kg, (1, hid_dim), dtype=jnp.float32)
    beta = 0.1 * jax.random.normal(kbt, (1, hid_dim), dtype=jnp.float32)
    w2 = jax.random.normal(kw2, (hid_dim, ground_dim), dtype=jnp.float32) * (1.0 / math.sqrt(hid_dim))
    b2 = jax.random.normal(kb2, (1, ground_dim), dtype=jnp.float32) * 0.02

    out = ground_head(x, w1, b1, gamma, beta, w2, b2, eps=eps)
    out = jax.block_until_ready(out)

    ref = reference_ground_head(x, w1, b1, gamma, beta, w2, b2, eps=eps)
    assert out.shape == (batch, ground_dim)
    assert jnp.allclose(out, ref, atol=1e-4, rtol=1e-4), "mismatch vs reference"

    print("KERNEL_OK")
</pallas_src>

<mosaic_0001>
module attributes {stable_mosaic.version = 11 : i64} {
  func.func @_ground_head_kernel(%arg0: i32, %arg1: memref<8x32xf32, #tpu.memory_space<vmem>>, %arg2: memref<32x64xf32, #tpu.memory_space<vmem>>, %arg3: memref<1x64xf32, #tpu.memory_space<vmem>>, %arg4: memref<64x128xf32, #tpu.memory_space<vmem>>, %arg5: memref<1x128xf32, #tpu.memory_space<vmem>>, %arg6: memref<8x128xf32, #tpu.memory_space<vmem>>) attributes {dimension_semantics = [#tpu.dimension_semantics<parallel>], iteration_bounds = array<i64: 1>, scalar_prefetch = 0 : i64, scratch_operands = 0 : i64, tpu.core_type = #tpu.core_type<tc>, window_params = [{transform_indices = @transform_0, window_bounds = array<i64: 8, 32>}, {pipeline_mode = #tpu.pipeline_mode<synchronous>, transform_indices = @transform_1, window_bounds = array<i64: 32, 64>}, {pipeline_mode = #tpu.pipeline_mode<synchronous>, transform_indices = @transform_2, window_bounds = array<i64: 1, 64>}, {pipeline_mode = #tpu.pipeline_mode<synchronous>, transform_indices = @transform_3, window_bounds = array<i64: 64, 128>}, {pipeline_mode = #tpu.pipeline_mode<synchronous>, transform_indices = @transform_4, window_bounds = array<i64: 1, 128>}, {transform_indices = @transform_5, window_bounds = array<i64: 8, 128>}]} {
    %c0 = arith.constant 0 : index
    %c0_0 = arith.constant 0 : index
    %0 = vector.load %arg1[%c0, %c0_0] : memref<8x32xf32, #tpu.memory_space<vmem>>, vector<8x32xf32>
    %c0_1 = arith.constant 0 : index
    %c0_2 = arith.constant 0 : index
    %1 = vector.load %arg2[%c0_1, %c0_2] : memref<32x64xf32, #tpu.memory_space<vmem>>, vector<32x64xf32>
    %cst = arith.constant dense<0.000000e+00> : vector<8x64xf32>
    %2 = tpu.matmul %0, %1, %cst {dimension_numbers = #tpu.dot_dimension_numbers<[1], [0], [0], [1], [0, 0, 1, 1], [], []>} : vector<8x32xf32>, vector<32x64xf32>, vector<8x64xf32> -> vector<8x64xf32>
    %c0_3 = arith.constant 0 : index
    %c0_4 = arith.constant 0 : index
    %3 = vector.load %arg3[%c0_3, %c0_4] : memref<1x64xf32, #tpu.memory_space<vmem>>, vector<1x64xf32>
    %c0_5 = arith.constant 0 : index
    %c0_6 = arith.constant 0 : index
    %4 = vector.load %arg4[%c0_5, %c0_6] : memref<64x128xf32, #tpu.memory_space<vmem>>, vector<64x128xf32>
    %c0_7 = arith.constant 0 : index
    %c0_8 = arith.constant 0 : index
    %5 = vector.load %arg5[%c0_7, %c0_8] : memref<1x128xf32, #tpu.memory_space<vmem>>, vector<1x128xf32>
    %6 = vector.broadcast %3 : vector<1x64xf32> to vector<8x64xf32>
    %7 = arith.addf %2, %6 : vector<8x64xf32>
    %cst_9 = arith.constant 5.000000e-01 : f32
    %8 = vector.broadcast %cst_9 : f32 to vector<8x64xf32>
    %9 = arith.mulf %7, %8 : vector<8x64xf32>
    %cst_10 = arith.constant 0.707106769 : f32
    %10 = vector.broadcast %cst_10 : f32 to vector<8x64xf32>
    %11 = arith.mulf %7, %10 : vector<8x64xf32>
    %12 = math.erf %11 : vector<8x64xf32>
    %cst_11 = arith.constant 1.000000e+00 : f32
    %13 = vector.broadcast %cst_11 : f32 to vector<8x64xf32>
    %14 = arith.addf %13, %12 : vector<8x64xf32>
    %15 = arith.mulf %9, %14 : vector<8x64xf32>
    %cst_12 = arith.constant dense<0.000000e+00> : vector<8xf32>
    %16 = vector.multi_reduction <add>, %15, %cst_12 [1] : vector<8x64xf32> to vector<8xf32>
    %17 = vector.shape_cast %16 : vector<8xf32> to vector<8x1xf32>
    %cst_13 = arith.constant 6.400000e+01 : f32
    %18 = vector.broadcast %cst_13 : f32 to vector<8x1xf32>
    %19 = arith.divf %17, %18 : vector<8x1xf32>
    %20 = arith.mulf %15, %15 : vector<8x64xf32>
    %cst_14 = arith.constant dense<0.000000e+00> : vector<8xf32>
    %21 = vector.multi_reduction <add>, %20, %cst_14 [1] : vector<8x64xf32> to vector<8xf32>
    %22 = vector.shape_cast %21 : vector<8xf32> to vector<8x1xf32>
    %cst_15 = arith.constant 6.400000e+01 : f32
    %23 = vector.broadcast %cst_15 : f32 to vector<8x1xf32>
    %24 = arith.divf %22, %23 : vector<8x1xf32>
    %25 = arith.mulf %19, %19 : vector<8x1xf32>
    %26 = arith.subf %24, %25 : vector<8x1xf32>
    %cst_16 = arith.constant 0.000000e+00 : f32
    %27 = vector.broadcast %cst_16 : f32 to vector<8x1xf32>
    %28 = arith.maximumf %26, %27 : vector<8x1xf32>
    %29 = vector.broadcast %19 : vector<8x1xf32> to vector<8x64xf32>
    %30 = arith.subf %15, %29 : vector<8x64xf32>
    %cst_17 = arith.constant 9.99999996E-13 : f32
    %31 = vector.broadcast %cst_17 : f32 to vector<8x1xf32>
    %32 = arith.addf %28, %31 : vector<8x1xf32>
    %33 = math.rsqrt %32 : vector<8x1xf32>
    %34 = vector.broadcast %33 : vector<8x1xf32> to vector<8x64xf32>
    %35 = arith.mulf %30, %34 : vector<8x64xf32>
    %cst_18 = arith.constant dense<0.000000e+00> : vector<8x128xf32>
    %36 = tpu.matmul %35, %4, %cst_18 {dimension_numbers = #tpu.dot_dimension_numbers<[1], [0], [0], [1], [0, 0, 1, 1], [], []>} : vector<8x64xf32>, vector<64x128xf32>, vector<8x128xf32> -> vector<8x128xf32>
    %37 = vector.broadcast %5 : vector<1x128xf32> to vector<8x128xf32>
    %38 = arith.addf %36, %37 : vector<8x128xf32>
    %c0_19 = arith.constant 0 : index
    %c0_20 = arith.constant 0 : index
    %39 = vector.load %arg6[%c0_19, %c0_20] : memref<8x128xf32, #tpu.memory_space<vmem>>, vector<8x128xf32>
    tpu.vector_store %arg6[%c0_19, %c0_20], %38 {strides = array<i32>} : memref<8x128xf32, #tpu.memory_space<vmem>>, vector<8x128xf32>,
    return
  }
  func.func @transform_0(%arg0: i32) -> (i32, i32) {
    %c0_i32 = arith.constant 0 : i32
    %c0_i32_0 = arith.constant 0 : i32
    return %arg0, %c0_i32 : i32, i32
  }
  func.func @transform_1(%arg0: i32) -> (i32, i32) {
    %c0_i32 = arith.constant 0 : i32
    %c0_i32_0 = arith.constant 0 : i32
    %c0_i32_1 = arith.constant 0 : i32
    return %c0_i32, %c0_i32_0 : i32, i32
  }
  func.func @transform_2(%arg0: i32) -> (i32, i32) {
    %c0_i32 = arith.constant 0 : i32
    %c0_i32_0 = arith.constant 0 : i32
    %c0_i32_1 = arith.constant 0 : i32
    return %c0_i32, %c0_i32_0 : i32, i32
  }
  func.func @transform_3(%arg0: i32) -> (i32, i32) {
    %c0_i32 = arith.constant 0 : i32
    %c0_i32_0 = arith.constant 0 : i32
    %c0_i32_1 = arith.constant 0 : i32
    return %c0_i32, %c0_i32_0 : i32, i32
  }
  func.func @transform_4(%arg0: i32) -> (i32, i32) {
    %c0_i32 = arith.constant 0 : i32
    %c0_i32_0 = arith.constant 0 : i32
    %c0_i32_1 = arith.constant 0 : i32
    return %c0_i32, %c0_i32_0 : i32, i32
  }
  func.func @transform_5(%arg0: i32) -> (i32, i32) {
    %c0_i32 = arith.constant 0 : i32
    %c0_i32_0 = arith.constant 0 : i32
    return %arg0, %c0_i32 : i32, i32
  }
}

module attributes {stable_mosaic.version = 11 : i64} {
  func.func @_ground_head_kernel(%arg0: i32, %arg1: memref<8x32xf32, #tpu.memory_space<vmem>>, %arg2: memref<32x64xf32, #tpu.memory_space<vmem>>, %arg3: memref<1x64xf32, #tpu.memory_space<vmem>>, %arg4: memref<64x128xf32, #tpu.memory_space<vmem>>, %arg5: memref<1x128xf32, #tpu.memory_space<vmem>>, %arg6: memref<8x128xf32, #tpu.memory_space<vmem>>) attributes {dimension_semantics = [#tpu.dimension_semantics<parallel>], iteration_bounds = array<i64: 1>, scalar_prefetch = 0 : i64, scratch_operands = 0 : i64, tpu.core_type = #tpu.core_type<tc>, window_params = [{transform_indices = @transform_0, window_bounds = array<i64: 8, 32>}, {pipeline_mode = #tpu.pipeline_mode<synchronous>, transform_indices = @transform_1, window_bounds = array<i64: 32, 64>}, {pipeline_mode = #tpu.pipeline_mode<synchronous>, transform_indices = @transform_2, window_bounds = array<i64: 1, 64>}, {pipeline_mode = #tpu.pipeline_mode<synchronous>, transform_indices = @transform_3, window_bounds = array<i64: 64, 128>}, {pipeline_mode = #tpu.pipeline_mode<synchronous>, transform_indices = @transform_4, window_bounds = array<i64: 1, 128>}, {transform_indices = @transform_5, window_bounds = array<i64: 8, 128>}]} {
    %c0 = arith.constant 0 : index
    %c0_0 = arith.constant 0 : index
    %0 = vector.load %arg1[%c0, %c0_0] : memref<8x32xf32, #tpu.memory_space<vmem>>, vector<8x32xf32>
    %c0_1 = arith.constant 0 : index
    %c0_2 = arith.constant 0 : index
    %1 = vector.load %arg2[%c0_1, %c0_2] : memref<32x64xf32, #tpu.memory_space<vmem>>, vector<32x64xf32>
    %cst = arith.constant dense<0.000000e+00> : vector<8x64xf32>
    %2 = tpu.matmul %0, %1, %cst {dimension_numbers = #tpu.dot_dimension_numbers<[1], [0], [0], [1], [0, 0, 1, 1], [], []>} : vector<8x32xf32>, vector<32x64xf32>, vector<8x64xf32> -> vector<8x64xf32>
    %c0_3 = arith.constant 0 : index
    %c0_4 = arith.constant 0 : index
    %3 = vector.load %arg3[%c0_3, %c0_4] : memref<1x64xf32, #tpu.memory_space<vmem>>, vector<1x64xf32>
    %c0_5 = arith.constant 0 : index
    %c0_6 = arith.constant 0 : index
    %4 = vector.load %arg4[%c0_5, %c0_6] : memref<64x128xf32, #tpu.memory_space<vmem>>, vector<64x128xf32>
    %c0_7 = arith.constant 0 : index
    %c0_8 = arith.constant 0 : index
    %5 = vector.load %arg5[%c0_7, %c0_8] : memref<1x128xf32, #tpu.memory_space<vmem>>, vector<1x128xf32>
    %6 = vector.broadcast %3 : vector<1x64xf32> to vector<8x64xf32>
    %7 = arith.addf %2, %6 : vector<8x64xf32>
    %cst_9 = arith.constant 5.000000e-01 : f32
    %8 = vector.broadcast %cst_9 : f32 to vector<8x64xf32>
    %9 = arith.mulf %7, %8 : vector<8x64xf32>
    %cst_10 = arith.constant 0.707106769 : f32
    %10 = vector.broadcast %cst_10 : f32 to vector<8x64xf32>
    %11 = arith.mulf %7, %10 : vector<8x64xf32>
    %12 = math.erf %11 : vector<8x64xf32>
    %cst_11 = arith.constant 1.000000e+00 : f32
    %13 = vector.broadcast %cst_11 : f32 to vector<8x64xf32>
    %14 = arith.addf %13, %12 : vector<8x64xf32>
    %15 = arith.mulf %9, %14 : vector<8x64xf32>
    %cst_12 = arith.constant dense<0.000000e+00> : vector<8xf32>
    %16 = vector.multi_reduction <add>, %15, %cst_12 [1] : vector<8x64xf32> to vector<8xf32>
    %17 = vector.shape_cast %16 : vector<8xf32> to vector<8x1xf32>
    %cst_13 = arith.constant 6.400000e+01 : f32
    %18 = vector.broadcast %cst_13 : f32 to vector<8x1xf32>
    %19 = arith.divf %17, %18 : vector<8x1xf32>
    %20 = arith.mulf %15, %15 : vector<8x64xf32>
    %cst_14 = arith.constant dense<0.000000e+00> : vector<8xf32>
    %21 = vector.multi_reduction <add>, %20, %cst_14 [1] : vector<8x64xf32> to vector<8xf32>
    %22 = vector.shape_cast %21 : vector<8xf32> to vector<8x1xf32>
    %cst_15 = arith.constant 6.400000e+01 : f32
    %23 = vector.broadcast %cst_15 : f32 to vector<8x1xf32>
    %24 = arith.divf %22, %23 : vector<8x1xf32>
    %25 = arith.mulf %19, %19 : vector<8x1xf32>
    %26 = arith.subf %24, %25 : vector<8x1xf32>
    %cst_16 = arith.constant 0.000000e+00 : f32
    %27 = vector.broadcast %cst_16 : f32 to vector<8x1xf32>
    %28 = arith.maximumf %26, %27 : vector<8x1xf32>
    %29 = vector.broadcast %19 : vector<8x1xf32> to vector<8x64xf32>
    %30 = arith.subf %15, %29 : vector<8x64xf32>
    %cst_17 = arith.constant 9.99999996E-13 : f32
    %31 = vector.broadcast %cst_17 : f32 to vector<8x1xf32>
    %32 = arith.addf %28, %31 : vector<8x1xf32>
    %33 = math.rsqrt %32 : vector<8x1xf32>
    %34 = vector.broadcast %33 : vector<8x1xf32> to vector<8x64xf32>
    %35 = arith.mulf %30, %34 : vector<8x64xf32>
    %cst_18 = arith.constant dense<0.000000e+00> : vector<8x128xf32>
    %36 = tpu.matmul %35, %4, %cst_18 {dimension_numbers = #tpu.dot_dimension_numbers<[1], [0], [0], [1], [0, 0, 1, 1], [], []>} : vector<8x64xf32>, vector<64x128xf32>, vector<8x128xf32> -> vector<8x128xf32>
    %37 = vector.broadcast %5 : vector<1x128xf32> to vector<8x128xf32>
    %38 = arith.addf %36, %37 : vector<8x128xf32>
    %c0_19 = arith.constant 0 : index
    %c0_20 = arith.constant 0 : index
    %39 = vector.load %arg6[%c0_19, %c0_20] : memref<8x128xf32, #tpu.memory_space<vmem>>, vector<8x128xf32>
    tpu.vector_store %arg6[%c0_19, %c0_20], %38 {strides = array<i32>} : memref<8x128xf32, #tpu.memory_space<vmem>>, vector<8x128xf32>,
    return
  }
  func.func @transform_0(%arg0: i32) -> (i32, i32) {
    %c0_i32 = arith.constant 0 : i32
    %c0_i32_0 = arith.constant 0 : i32
    return %arg0, %c0_i32 : i32, i32
  }
  func.func @transform_1(%arg0: i32) -> (i32, i32) {
    %c0_i32 = arith.constant 0 : i32
    %c0_i32_0 = arith.constant 0 : i32
    %c0_i32_1 = arith.constant 0 : i32
    return %c0_i32, %c0_i32_0 : i32, i32
  }
  func.func @transform_2(%arg0: i32) -> (i32, i32) {
    %c0_i32 = arith.constant 0 : i32
    %c0_i32_0 = arith.constant 0 : i32
    %c0_i32_1 = arith.constant 0 : i32
    return %c0_i32, %c0_i32_0 : i32, i32
  }
  func.func @transform_3(%arg0: i32) -> (i32, i32) {
    %c0_i32 = arith.constant 0 : i32
    %c0_i32_0 = arith.constant 0 : i32
    %c0_i32_1 = arith.constant 0 : i32
    return %c0_i32, %c0_i32_0 : i32, i32
  }
  func.func @transform_4(%arg0: i32) -> (i32, i32) {
    %c0_i32 = arith.constant 0 : i32
    %c0_i32_0 = arith.constant 0 : i32
    %c0_i32_1 = arith.constant 0 : i32
    return %c0_i32, %c0_i32_0 : i32, i32
  }
  func.func @transform_5(%arg0: i32) -> (i32, i32) {
    %c0_i32 = arith.constant 0 : i32
    %c0_i32_0 = arith.constant 0 : i32
    return %arg0, %c0_i32 : i32, i32
  }
}

</mosaic_0001>

<bundles_post_ra>
// kernel: tpu_custom_call.1
= control target key start
LH: loop header
LB: loop body
LE: loop exit
PB: predicated region body
PF: predicated region fallthrough
CT: control target
= control target key end

     0   :  { %10 = vsyncpa [#allocation3], 0  ;;  %s549_s0 = inlined_call_operand.hbm [shape: f32[8,32], index: 0, kind: input, shape index: {}]   ;;  %s550_s1 = inlined_call_operand.hbm [shape: f32[32,64], index: 1, kind: input, shape index: {}]   ;;  %s551_s2 = inlined_call_operand.vmem [shape: f32[1,64], index: 2, kind: input, shape index: {}]   ;;  %s552_s3 = inlined_call_operand.hbm [shape: f32[64,128], index: 3, kind: input, shape index: {}]   ;;  %s553_s4 = inlined_call_operand.vmem [shape: f32[1,128], index: 4, kind: input, shape index: {}]   ;;  %s554_s5 = inlined_call_operand.hbm [shape: f32[8,128], index: 5, kind: output, shape index: {}]  }
   0x1   :  { %11 = vsyncpa [#allocation6], 0 }
   0x2   :  { %12 = vsyncpa [#allocation4], 0  ;;  %s447_s18 = smov [#allocation5]   ;;  %s353_s22 = scalar_lea.hbm %s550_s1, 512 }
   0x3   :  { %s28_s19 = sshll.u32 %s447_s18, 4  ;;  %p354_p0 = scmp.ne.s32.totalorder %s550_s1, %s353_s22  ;;  %s29_s19 = int_to_ptr.vmem [resolvable:$true] %s28_s19 }
   0x4   :  { %p357_p1 = scmp.lt.u32.totalorder %s353_s22, %s550_s1 }
   0x6   :  { %p359_p2 = pnand %p357_p1, %p354_p0 }
   0x8   :  { %362 = shalt.err (!%p359_p2)
}
   0x9   :  { %s363_s27 = scalar_lea.vmem %s29_s19, 512  ;;  %p368_p4 = scmp.lt.s32.totalorder %s29_s19, %s29_s19 }
   0xa   :  { %p364_p3 = scmp.ne.s32.totalorder %s29_s19, %s363_s27  ;;  %p369_p5 = scmp.lt.s32.totalorder %s363_s27, %s363_s27 }
   0xc   :  { %p370_p6 = por %p369_p5, %p368_p4 }
   0xe   :  { %p371_p7 = pnand %p370_p6, %p364_p3 }
  0x10   :  { %374 = shalt.err (!%p371_p7)
}
  0x11   :  { %s448_s28 = smov 128   ;;  %s449_s29 = smov 8  }
  0x12   :  { %34 = dma.hbm_to_vmem [thread:$0]  %s550_s1, 512, %s29_s19, [#allocation6], %s448_s28, %s448_s28, %s449_s29  }
  0x13   :  { %s450_s7 = smov [#allocation2]   ;;  %s451_s9 = smov [#allocation7]  }
  0x14   :  { %s19_s8 = sshll.u32 %s450_s7, 4  ;;  %s42_s10 = sshll.u32 %s451_s9, 4  ;;  %s20_s8 = int_to_ptr.vmem [resolvable:$true] %s19_s8  ;;  %s43_s10 = int_to_ptr.vmem [resolvable:$true] %s42_s10 }
  0x15   :  { %s375_s13 = scalar_lea.hbm %s549_s0, 128 }
  0x16   :  { %p376_p8 = scmp.ne.s32.totalorder %s549_s0, %s375_s13  ;;  %p379_p9 = scmp.lt.u32.totalorder %s375_s13, %s549_s0 }
  0x18   :  { %p381_p10 = pnand %p379_p9, %p376_p8 }
  0x1a   :  { %384 = shalt.err (!%p381_p10)
}
  0x1b   :  { %s385_s1 = scalar_lea.vmem %s20_s8, 128  ;;  %p390_p12 = scmp.lt.s32.totalorder %s20_s8, %s20_s8 }
  0x1c   :  { %p386_p11 = scmp.ne.s32.totalorder %s20_s8, %s385_s1  ;;  %p391_p13 = scmp.lt.s32.totalorder %s385_s1, %s385_s1 }
  0x1e   :  { %p392_p0 = por %p391_p13, %p390_p12 }
  0x20   :  { %p393_p1 = pnand %p392_p0, %p386_p11 }
  0x22   :  { %396 = shalt.err (!%p393_p1)
}
  0x23   :  { %22 = dma.hbm_to_vmem [thread:$0]  %s549_s0, 128, %s20_s8, [#allocation3]  }
  0x24   :  { %s397_s22 = scalar_lea.hbm %s552_s3, 1024 }
  0x25   :  { %p398_p2 = scmp.ne.s32.totalorder %s552_s3, %s397_s22  ;;  %p401_p3 = scmp.lt.u32.totalorder %s397_s22, %s552_s3 }
  0x27   :  { %p403_p4 = pnand %p401_p3, %p398_p2 }
  0x29   :  { %406 = shalt.err (!%p403_p4)
}
  0x2a   :  { %s407_s27 = scalar_lea.vmem %s43_s10, 1024  ;;  %p412_p6 = scmp.lt.s32.totalorder %s43_s10, %s43_s10 }
  0x2b   :  { %p408_p5 = scmp.ne.s32.totalorder %s43_s10, %s407_s27  ;;  %p413_p7 = scmp.lt.s32.totalorder %s407_s27, %s407_s27 }
  0x2d   :  { %p414_p8 = por %p413_p7, %p412_p6 }
  0x2f   :  { %p415_p9 = pnand %p414_p8, %p408_p5 }
  0x31   :  { %418 = shalt.err (!%p415_p9)
}
  0x32   :  { %48 = dma.hbm_to_vmem [thread:$0]  %s552_s3, 1024, %s43_s10, [#allocation6], %s448_s28, %s448_s28, %s449_s29  }
  0x33   :  { %441 = dma.done.wait [#allocation3], 128  }
  0x34   :  { %442 = vsyncadd [#allocation3], 4294967168 }
  0x35   :  { %443 = dma.done.wait [#allocation6], 1536  }
  0x36   :  { %444 = vsyncadd [#allocation6], 4294965760  ;;  %v452_v0 = vmov 0.0|0.0   ;;  %vm453_vm0 = vmmov 0   ;;  %v454_v1 = vmov 0.0   ;;  %v61_v2 = vld [vmem:[#allocation5] sm:$0xff] }
  0x37   :  { %322 = vmatprep.subr.bf16.mxu0 %v452_v0  ;;  %300 = vmatprep.mubr.msk.f32.mxu0 %vm453_vm0, %v454_v1  ;;  %v62_v3 = vld [vmem:[#allocation5 + $0x8] sm:$0xff]  ;;  %v63_v4 = vld [vmem:[#allocation5 + $0x10] sm:$0xff]  ;;  %v64_v6 = vld [vmem:[#allocation5 + $0x18] sm:$0xff]  ;;  %vm81_vm1 = vcmask 261120   ;;  %vm160_vm2 = vcmask 523264   ;;  %s455_s6 = smov [#allocation8]  }
  0x38   :  { %328 = vmatprep.subr.bf16.mxu1 %v452_v0  ;;  %319 = vmatprep.mubr.msk.f32.mxu1 %vm453_vm0, %v454_v1  ;;  %v323_v5 = vpack.c.bf16 %v62_v3, %v61_v2  ;;  %v326_v7 = vpack.c.bf16 %v64_v6, %v63_v4  ;;  %v60_v8 = vld [vmem:[#allocation2] sm:$0xff]  ;;  %v66_v21 = vld [vmem:[#allocation7] sm:$0xff]  ;;  %v67_v22 = vld [vmem:[#allocation7 + $0x8] sm:$0xff]  ;;  %s264_s7 = sshll.u32 %s455_s6, 4  ;;  %s265_s7 = int_to_ptr.vmem [resolvable:$true] %s264_s7 }
  0x39   :  { %v274_v9 = vld [vmem:[%s551_s2] ss:$0 sm:$0xff]  ;;  %v329_v23 = vpack.c.bf16 %v67_v22, %v66_v21  ;;  %v68_v24 = vld [vmem:[#allocation7 + $0x10] sm:$0xff]  ;;  %v70_v27 = vld [vmem:[#allocation7 + $0x20] sm:$0xff]  ;;  %s419_s8 = scalar_lea.vmem %s265_s7, 128  ;;  %p424_p11 = scmp.lt.s32.totalorder %s265_s7, %s265_s7 }
  0x3a   :  { %324 = vmatpush3.bf16.msra.mxu0 %v323_v5  ;;  %v69_v25 = vld [vmem:[#allocation7 + $0x18] sm:$0xff]  ;;  %v71_v28 = vld [vmem:[#allocation7 + $0x28] sm:$0xff]  ;;  %v72_v30 = vld [vmem:[#allocation7 + $0x30] sm:$0xff]  ;;  %p420_p10 = scmp.ne.s32.totalorder %s265_s7, %s419_s8  ;;  %p425_p12 = scmp.lt.s32.totalorder %s419_s8, %s419_s8 }
  0x3b   :  { %325 = vmatprep.subr.bf16.mxu0 %v452_v0  ;;  %330 = vmatpush3.bf16.msra.mxu1 %v329_v23  ;;  %v332_v26 = vpack.c.bf16 %v69_v25, %v68_v24  ;;  %v335_v29 = vpack.c.bf16 %v71_v28, %v70_v27  ;;  %v73_v31 = vld [vmem:[#allocation7 + $0x38] sm:$0xff] }
  0x3c   :  { %331 = vmatprep.subr.bf16.mxu1 %v452_v0  ;;  %v338_v32 = vpack.c.bf16 %v73_v31, %v72_v30  ;;  %v276_v44 = vld [vmem:[%s553_s4] ss:$0 sm:$0xff]  ;;  %p426_p13 = por %p425_p12, %p424_p11 }
  0x3e   :  { %327 = vmatpush3.bf16.msra.mxu0 %v326_v7  ;;  %p427_p0 = pnand %p426_p13, %p420_p10 }
  0x3f   :  { %333 = vmatpush3.bf16.msra.mxu1 %v332_v26 }
  0x40   :  { %334 = vmatprep.subr.bf16.mxu1 %v452_v0 }
  0x41   :  { %301 = vmatmul.mubr.msk.f32.vlgmr.msra.gmra.mrb[0].mxu0 %vm81_vm1, %v60_v8 }
  0x43   :  { %336 = vmatpush3.bf16.msra.mxu1 %v335_v29 }
  0x44   :  { %337 = vmatprep.subr.bf16.mxu1 %v452_v0 }
  0x47   :  { %339 = vmatpush3.bf16.msra.mxu1 %v338_v32 }
 0x114   :  { %v151_v10 = vpop.f32.mrb[0].mxu0 }
 0x115   :  { %v152_v11 = vadd.f32 %v274_v9, %v151_v10  ;;  %v302_v12 = vpop.f32.mrb[1].mxu0 }
 0x117   :  { %v156_v13 = vmul.f32 0.70710677, %v152_v11  ;;  %v155_v15 = vmul.f32 0.5, %v152_v11 }
 0x119   :  { %349 = verf.f32 %v156_v13 }
 0x123   :  { %v350_v14 = vpop.eup %349 }
 0x124   :  { %v158_v16 = vadd.f32 1.0, %v350_v14 }
 0x126   :  { %v159_v17 = vmul.f32 %v158_v16, %v155_v15 }
 0x128   :  { %v161_v18 = vsel %vm160_vm2, %v159_v17, 0.0  ;;  %v166_v19 = vmul.f32 %v159_v17, %v159_v17 }
 0x129   :  { %162 = vadd.xlane.f32.xlu0 %v161_v18 }
 0x12a   :  { %v167_v20 = vsel %vm160_vm2, %v166_v19, 0.0 }
 0x12d   :  { %168 = vadd.xlane.f32.xlu0 %v167_v20 }
 0x1b6   :  { %v163_v33 = vpop.xlane.xlu0 %162 }
 0x1b7   :  { %v165_v34 = vmul.f32 0.015625, %v163_v33 }
 0x1b9   :  { %v171_v36 = vmul.f32 %v165_v34, %v165_v34  ;;  %v174_v41 = vsub.f32 %v159_v17, %v165_v34 }
 0x1ba   :  { %v169_v35 = vpop.xlane.xlu0 %168 }
 0x1bb   :  { %v170_v37 = vmul.f32 0.015625, %v169_v35 }
 0x1bd   :  { %v172_v38 = vsub.f32 %v170_v37, %v171_v36 }
 0x1bf   :  { %v173_v39 = vmax.f32 %v172_v38, 0.0 }
 0x1c1   :  { %v175_v40 = vadd.f32 1e-12, %v173_v39 }
 0x1c3   :  { %351 = vrsqrt.f32 %v175_v40 }
 0x1cd   :  { %v352_v42 = vpop.eup %351 }
 0x1ce   :  { %v177_v43 = vmul.f32 %v352_v42, %v174_v41 }
 0x1d0   :  { %320 = vmatmul.mubr.msk.f32.vlgmr.msra.gmra.mrb[0].mxu1 %vm160_vm2, %v177_v43 }
 0x2a3   :  { %v253_v45 = vpop.f32.mrb[0].mxu1 }
 0x2a4   :  { %v254_v46 = vadd.f32 %v276_v44, %v253_v45  ;;  %v321_v47 = vpop.f32.mrb[1].mxu1 }
 0x2a6   :  { %257 = vst [vmem:[#allocation8] sm:$0xff] %v254_v46 }
 0x2a7   :  { %430 = shalt.err (!%p427_p0)
}
 0x2a8   :  { %s431_s11 = scalar_lea.hbm %s554_s5, 128 }
 0x2a9   :  { %p432_p1 = scmp.ne.s32.totalorder %s554_s5, %s431_s11  ;;  %p435_p2 = scmp.lt.u32.totalorder %s431_s11, %s554_s5 }
 0x2ab   :  { %p437_p3 = pnand %p435_p2, %p432_p1 }
 0x2ad   :  { %440 = shalt.err (!%p437_p3)
}
 0x2ae   :  { %267 = dma.vmem_to_hbm [thread:$0]  %s265_s7, 128, %s554_s5, [#allocation4]  }
 0x2af   :  { %445 = dma.done.wait [#allocation4], 128  }
 0x2b0   :  { %446 = vsyncadd [#allocation4], 4294967168 }
 0x2b1   :  { %271 = vsyncpa [#allocation3], 1 }
 0x2b2   :  { %272 = vsyncpa [#allocation6], 1 }
 0x2b3   :  { %273 = vsyncpa [#allocation4], 1 }

// kernel: tpu_custom_call.1
= control target key start
LH: loop header
LB: loop body
LE: loop exit
PB: predicated region body
PF: predicated region fallthrough
CT: control target
= control target key end

     0   :  { %10 = vsyncpa [#allocation3], 0  ;;  %s549_s0 = inlined_call_operand.hbm [shape: f32[8,32], index: 0, kind: input, shape index: {}]   ;;  %s550_s1 = inlined_call_operand.hbm [shape: f32[32,64], index: 1, kind: input, shape index: {}]   ;;  %s551_s2 = inlined_call_operand.vmem [shape: f32[1,64], index: 2, kind: input, shape index: {}]   ;;  %s552_s3 = inlined_call_operand.hbm [shape: f32[64,128], index: 3, kind: input, shape index: {}]   ;;  %s553_s4 = inlined_call_operand.vmem [shape: f32[1,128], index: 4, kind: input, shape index: {}]   ;;  %s554_s5 = inlined_call_operand.hbm [shape: f32[8,128], index: 5, kind: output, shape index: {}]  }
   0x1   :  { %11 = vsyncpa [#allocation6], 0 }
   0x2   :  { %12 = vsyncpa [#allocation4], 0  ;;  %s447_s18 = smov [#allocation5]   ;;  %s353_s22 = scalar_lea.hbm %s550_s1, 512 }
   0x3   :  { %s28_s19 = sshll.u32 %s447_s18, 4  ;;  %p354_p0 = scmp.ne.s32.totalorder %s550_s1, %s353_s22  ;;  %s29_s19 = int_to_ptr.vmem [resolvable:$true] %s28_s19 }
   0x4   :  { %p357_p1 = scmp.lt.u32.totalorder %s353_s22, %s550_s1 }
   0x6   :  { %p359_p2 = pnand %p357_p1, %p354_p0 }
   0x8   :  { %362 = shalt.err (!%p359_p2)
}
   0x9   :  { %s363_s27 = scalar_lea.vmem %s29_s19, 512  ;;  %p368_p4 = scmp.lt.s32.totalorder %s29_s19, %s29_s19 }
   0xa   :  { %p364_p3 = scmp.ne.s32.totalorder %s29_s19, %s363_s27  ;;  %p369_p5 = scmp.lt.s32.totalorder %s363_s27, %s363_s27 }
   0xc   :  { %p370_p6 = por %p369_p5, %p368_p4 }
   0xe   :  { %p371_p7 = pnand %p370_p6, %p364_p3 }
  0x10   :  { %374 = shalt.err (!%p371_p7)
}
  0x11   :  { %s448_s28 = smov 128   ;;  %s449_s29 = smov 8  }
  0x12   :  { %34 = dma.hbm_to_vmem [thread:$0]  %s550_s1, 512, %s29_s19, [#allocation6], %s448_s28, %s448_s28, %s449_s29  }
  0x13   :  { %s450_s7 = smov [#allocation2]   ;;  %s451_s9 = smov [#allocation7]  }
  0x14   :  { %s19_s8 = sshll.u32 %s450_s7, 4  ;;  %s42_s10 = sshll.u32 %s451_s9, 4  ;;  %s20_s8 = int_to_ptr.vmem [resolvable:$true] %s19_s8  ;;  %s43_s10 = int_to_ptr.vmem [resolvable:$true] %s42_s10 }
  0x15   :  { %s375_s13 = scalar_lea.hbm %s549_s0, 128 }
  0x16   :  { %p376_p8 = scmp.ne.s32.totalorder %s549_s0, %s375_s13  ;;  %p379_p9 = scmp.lt.u32.totalorder %s375_s13, %s549_s0 }
  0x18   :  { %p381_p10 = pnand %p379_p9, %p376_p8 }
  0x1a   :  { %384 = shalt.err (!%p381_p10)
}
  0x1b   :  { %s385_s1 = scalar_lea.vmem %s20_s8, 128  ;;  %p390_p12 = scmp.lt.s32.totalorder %s20_s8, %s20_s8 }
  0x1c   :  { %p386_p11 = scmp.ne.s32.totalorder %s20_s8, %s385_s1  ;;  %p391_p13 = scmp.lt.s32.totalorder %s385_s1, %s385_s1 }
  0x1e   :  { %p392_p0 = por %p391_p13, %p390_p12 }
  0x20   :  { %p393_p1 = pnand %p392_p0, %p386_p11 }
  0x22   :  { %396 = shalt.err (!%p393_p1)
}
  0x23   :  { %22 = dma.hbm_to_vmem [thread:$0]  %s549_s0, 128, %s20_s8, [#allocation3]  }
  0x24   :  { %s397_s22 = scalar_lea.hbm %s552_s3, 1024 }
  0x25   :  { %p398_p2 = scmp.ne.s32.totalorder %s552_s3, %s397_s22  ;;  %p401_p3 = scmp.lt.u32.totalorder %s397_s22, %s552_s3 }
  0x27   :  { %p403_p4 = pnand %p401_p3, %p398_p2 }
  0x29   :  { %406 = shalt.err (!%p403_p4)
}
  0x2a   :  { %s407_s27 = scalar_lea.vmem %s43_s10, 1024  ;;  %p412_p6 = scmp.lt.s32.totalorder %s43_s10, %s43_s10 }
  0x2b   :  { %p408_p5 = scmp.ne.s32.totalorder %s43_s10, %s407_s27  ;;  %p413_p7 = scmp.lt.s32.totalorder %s407_s27, %s407_s27 }
  0x2d   :  { %p414_p8 = por %p413_p7, %p412_p6 }
  0x2f   :  { %p415_p9 = pnand %p414_p8, %p408_p5 }
  0x31   :  { %418 = shalt.err (!%p415_p9)
}
  0x32   :  { %48 = dma.hbm_to_vmem [thread:$0]  %s552_s3, 1024, %s43_s10, [#allocation6], %s448_s28, %s448_s28, %s449_s29  }
  0x33   :  { %441 = dma.done.wait [#allocation3], 128  }
  0x34   :  { %442 = vsyncadd [#allocation3], 4294967168 }
  0x35   :  { %443 = dma.done.wait [#allocation6], 1536  }
  0x36   :  { %444 = vsyncadd [#allocation6], 4294965760  ;;  %v452_v0 = vmov 0.0|0.0   ;;  %vm453_vm0 = vmmov 0   ;;  %v454_v1 = vmov 0.0   ;;  %v61_v2 = vld [vmem:[#allocation5] sm:$0xff] }
  0x37   :  { %322 = vmatprep.subr.bf16.mxu0 %v452_v0  ;;  %300 = vmatprep.mubr.msk.f32.mxu0 %vm453_vm0, %v454_v1  ;;  %v62_v3 = vld [vmem:[#allocation5 + $0x8] sm:$0xff]  ;;  %v63_v4 = vld [vmem:[#allocation5 + $0x10] sm:$0xff]  ;;  %v64_v6 = vld [vmem:[#allocation5 + $0x18] sm:$0xff]  ;;  %vm81_vm1 = vcmask 261120   ;;  %vm160_vm2 = vcmask 523264   ;;  %s455_s6 = smov [#allocation8]  }
  0x38   :  { %328 = vmatprep.subr.bf16.mxu1 %v452_v0  ;;  %319 = vmatprep.mubr.msk.f32.mxu1 %vm453_vm0, %v454_v1  ;;  %v323_v5 = vpack.c.bf16 %v62_v3, %v61_v2  ;;  %v326_v7 = vpack.c.bf16 %v64_v6, %v63_v4  ;;  %v60_v8 = vld [vmem:[#allocation2] sm:$0xff]  ;;  %v66_v21 = vld [vmem:[#allocation7] sm:$0xff]  ;;  %v67_v22 = vld [vmem:[#allocation7 + $0x8] sm:$0xff]  ;;  %s264_s7 = sshll.u32 %s455_s6, 4  ;;  %s265_s7 = int_to_ptr.vmem [resolvable:$true] %s264_s7 }
  0x39   :  { %v274_v9 = vld [vmem:[%s551_s2] ss:$0 sm:$0xff]  ;;  %v329_v23 = vpack.c.bf16 %v67_v22, %v66_v21  ;;  %v68_v24 = vld [vmem:[#allocation7 + $0x10] sm:$0xff]  ;;  %v70_v27 = vld [vmem:[#allocation7 + $0x20] sm:$0xff]  ;;  %s419_s8 = scalar_lea.vmem %s265_s7, 128  ;;  %p424_p11 = scmp.lt.s32.totalorder %s265_s7, %s265_s7 }
  0x3a   :  { %324 = vmatpush3.bf16.msra.mxu0 %v323_v5  ;;  %v69_v25 = vld [vmem:[#allocation7 + $0x18] sm:$0xff]  ;;  %v71_v28 = vld [vmem:[#allocation7 + $0x28] sm:$0xff]  ;;  %v72_v30 = vld [vmem:[#allocation7 + $0x30] sm:$0xff]  ;;  %p420_p10 = scmp.ne.s32.totalorder %s265_s7, %s419_s8  ;;  %p425_p12 = scmp.lt.s32.totalorder %s419_s8, %s419_s8 }
  0x3b   :  { %325 = vmatprep.subr.bf16.mxu0 %v452_v0  ;;  %330 = vmatpush3.bf16.msra.mxu1 %v329_v23  ;;  %v332_v26 = vpack.c.bf16 %v69_v25, %v68_v24  ;;  %v335_v29 = vpack.c.bf16 %v71_v28, %v70_v27  ;;  %v73_v31 = vld [vmem:[#allocation7 + $0x38] sm:$0xff] }
  0x3c   :  { %331 = vmatprep.subr.bf16.mxu1 %v452_v0  ;;  %v338_v32 = vpack.c.bf16 %v73_v31, %v72_v30  ;;  %v276_v44 = vld [vmem:[%s553_s4] ss:$0 sm:$0xff]  ;;  %p426_p13 = por %p425_p12, %p424_p11 }
  0x3e   :  { %327 = vmatpush3.bf16.msra.mxu0 %v326_v7  ;;  %p427_p0 = pnand %p426_p13, %p420_p10 }
  0x3f   :  { %333 = vmatpush3.bf16.msra.mxu1 %v332_v26 }
  0x40   :  { %334 = vmatprep.subr.bf16.mxu1 %v452_v0 }
  0x41   :  { %301 = vmatmul.mubr.msk.f32.vlgmr.msra.gmra.mrb[0].mxu0 %vm81_vm1, %v60_v8 }
  0x43   :  { %336 = vmatpush3.bf16.msra.mxu1 %v335_v29 }
  0x44   :  { %337 = vmatprep.subr.bf16.mxu1 %v452_v0 }
  0x47   :  { %339 = vmatpush3.bf16.msra.mxu1 %v338_v32 }
 0x114   :  { %v151_v10 = vpop.f32.mrb[0].mxu0 }
 0x115   :  { %v152_v11 = vadd.f32 %v274_v9, %v151_v10  ;;  %v302_v12 = vpop.f32.mrb[1].mxu0 }
 0x117   :  { %v156_v13 = vmul.f32 0.70710677, %v152_v11  ;;  %v155_v15 = vmul.f32 0.5, %v152_v11 }
 0x119   :  { %349 = verf.f32 %v156_v13 }
 0x123   :  { %v350_v14 = vpop.eup %349 }
 0x124   :  { %v158_v16 = vadd.f32 1.0, %v350_v14 }
 0x126   :  { %v159_v17 = vmul.f32 %v158_v16, %v155_v15 }
 0x128   :  { %v161_v18 = vsel %vm160_vm2, %v159_v17, 0.0  ;;  %v166_v19 = vmul.f32 %v159_v17, %v159_v17 }
 0x129   :  { %162 = vadd.xlane.f32.xlu0 %v161_v18 }
 0x12a   :  { %v167_v20 = vsel %vm160_vm2, %v166_v19, 0.0 }
 0x12d   :  { %168 = vadd.xlane.f32.xlu0 %v167_v20 }
 0x1b6   :  { %v163_v33 = vpop.xlane.xlu0 %162 }
 0x1b7   :  { %v165_v34 = vmul.f32 0.015625, %v163_v33 }
 0x1b9   :  { %v171_v36 = vmul.f32 %v165_v34, %v165_v34  ;;  %v174_v41 = vsub.f32 %v159_v17, %v165_v34 }
 0x1ba   :  { %v169_v35 = vpop.xlane.xlu0 %168 }
 0x1bb   :  { %v170_v37 = vmul.f32 0.015625, %v169_v35 }
 0x1bd   :  { %v172_v38 = vsub.f32 %v170_v37, %v171_v36 }
 0x1bf   :  { %v173_v39 = vmax.f32 %v172_v38, 0.0 }
 0x1c1   :  { %v175_v40 = vadd.f32 1e-12, %v173_v39 }
 0x1c3   :  { %351 = vrsqrt.f32 %v175_v40 }
 0x1cd   :  { %v352_v42 = vpop.eup %351 }
 0x1ce   :  { %v177_v43 = vmul.f32 %v352_v42, %v174_v41 }
 0x1d0   :  { %320 = vmatmul.mubr.msk.f32.vlgmr.msra.gmra.mrb[0].mxu1 %vm160_vm2, %v177_v43 }
 0x2a3   :  { %v253_v45 = vpop.f32.mrb[0].mxu1 }
 0x2a4   :  { %v254_v46 = vadd.f32 %v276_v44, %v253_v45  ;;  %v321_v47 = vpop.f32.mrb[1].mxu1 }
 0x2a6   :  { %257 = vst [vmem:[#allocation8] sm:$0xff] %v254_v46 }
 0x2a7   :  { %430 = shalt.err (!%p427_p0)
}
 0x2a8   :  { %s431_s11 = scalar_lea.hbm %s554_s5, 128 }
 0x2a9   :  { %p432_p1 = scmp.ne.s32.totalorder %s554_s5, %s431_s11  ;;  %p435_p2 = scmp.lt.u32.totalorder %s431_s11, %s554_s5 }
 0x2ab   :  { %p437_p3 = pnand %p435_p2, %p432_p1 }
 0x2ad   :  { %440 = shalt.err (!%p437_p3)
}
 0x2ae   :  { %267 = dma.vmem_to_hbm [thread:$0]  %s265_s7, 128, %s554_s5, [#allocation4]  }
 0x2af   :  { %445 = dma.done.wait [#allocation4], 128  }
 0x2b0   :  { %446 = vsyncadd [#allocation4], 4294967168 }
 0x2b1   :  { %271 = vsyncpa [#allocation3], 1 }
 0x2b2   :  { %272 = vsyncpa [#allocation6], 1 }
 0x2b3   :  { %273 = vsyncpa [#allocation4], 1 }

</bundles_post_ra>
